<compile_context>
chip_gen: v7x
topology: tpu7x:2x2x1
jax: 0.10.0
libtpu: 0.0.40
codegen_flags: <defaults>
</compile_context>

<pallas_src>
import jax
import jax.numpy as jnp
from jax.experimental import pallas as pl
from jax.experimental.pallas import tpu as pltpu

N_CLSS = 3          # real number of classes
HIDDEN = 32         # logical hidden width of the stand-in MLP
H_PAD = 128         # lane-padded hidden width
OUT_PAD = 128       # lane-padded classifier width
NEG_INF = -1e30     # bias for padded class lanes -> exp() underflows to 0


def _ped_muster_kernel(z_ref, w1_ref, wo_ref, bo_ref, out_ref):
    """Fused pedMondel-style forward + softmax.

    z_ref  : (B, K_pad)   fused [x_flat | f_flat | v_flat | 1 | 0-pad] slab
    w1_ref : (K_pad, 128) fused [tile(wx/T); wf; wv; bias] weight (zero-padded)
    wo_ref : (128, 128)   classifier weight (zero-padded)
    bo_ref : (1, 128)     classifier bias (-1e30 on padded class lanes)
    out_ref: (B, 128)     softmax probabilities (lane-dense; cols >= 3 are ~0)
    """
    # single fused matmul: branch projections + temporal mean + biases
    h = jnp.dot(z_ref[...], w1_ref[...], preferred_element_type=jnp.float32)
    h = jnp.maximum(h, 0.0)                                  # (B, 128)

    # classifier head
    logits = jnp.dot(h, wo_ref[...],
                     preferred_element_type=jnp.float32) + bo_ref[...]  # (B, 128)

    # numerically-stable softmax over the class axis; padded lanes hold -1e30
    # so they contribute exp() == 0 and do not perturb the real 3 classes.
    m = jnp.max(logits, axis=1, keepdims=True)
    e = jnp.exp(logits - m)
    out_ref[...] = (e / jnp.sum(e, axis=1, keepdims=True)).astype(out_ref.dtype)


def init_params(key, d_x, d_f, d_v, hidden=HIDDEN, n_clss=N_CLSS):
    """Deterministic synthetic parameter init (stand-in for checkpoint load)."""
    ks = jax.random.split(key, 4)

    def lin(k, d_in, d_out):
        scale = 1.0 / jnp.sqrt(jnp.float32(d_in))
        w = jax.random.uniform(k, (d_in, d_out), jnp.float32, -scale, scale)
        b = jnp.zeros((1, d_out), jnp.float32)
        return w, b

    wx, bx = lin(ks[0], d_x, hidden)
    wf, bf = lin(ks[1], d_f, hidden)
    wv, bv = lin(ks[2], d_v, hidden)
    wo, bo = lin(ks[3], hidden, n_clss)
    return (wx, bx, wf, bf, wv, bv, wo, bo)


def prepare_params(params, n_frames):
    """Fold branch weights / biases / temporal mean into one lane-dense weight.

    Done once, outside the kernel.  Returns (w1, wo_p, bo_p, k_pad).
    """
    wx, bx, wf, bf, wv, bv, wo, bo = params
    hidden = wx.shape[1]

    # temporal mean over T folded into the keypoint weight (contraction trick)
    wx_fold = jnp.tile(wx / jnp.float32(n_frames), (n_frames, 1))  # (T*Dx, H)
    bias1 = bx + bf + bv                                           # (1, H)

    w1 = jnp.concatenate([wx_fold, wf, wv, bias1], axis=0)         # (Dtot+1, H)
    k_raw = w1.shape[0]
    k_pad = ((k_raw + 127) // 128) * 128
    w1 = jnp.pad(w1, ((0, k_pad - k_raw), (0, H_PAD - hidden)))    # (K_pad, 128)

    wo_p = jnp.pad(wo, ((0, H_PAD - hidden), (0, OUT_PAD - N_CLSS)))  # (128, 128)
    bo_p = jnp.pad(bo, ((0, 0), (0, OUT_PAD - N_CLSS)),
                   constant_values=NEG_INF)                           # (1, 128)
    return w1, wo_p, bo_p, k_pad


def muster_forward(x, f, v, fused_params):
    """x: (B, C_kp, T, J)  f: (B, C_f, H, W)  v: (B, C_v, T)  -> (B, 3) probs."""
    w1, wo_p, bo_p, k_pad = fused_params
    B, _, T, _ = x.shape

    # channel-first -> one channel-last fused slab (glue only; compute in-kernel)
    xk = jnp.transpose(x, (0, 2, 1, 3)).reshape(B, -1)    # (B, T*C_kp*J), T-major
    fk = f.reshape(B, -1)                                 # (B, Df)
    vk = v.reshape(B, -1)                                 # (B, Dv)
    ones = jnp.ones((B, 1), jnp.float32)                  # bias column
    z = jnp.concatenate([xk, fk, vk, ones], axis=1)       # (B, Dtot+1)
    z = jnp.pad(z, ((0, 0), (0, k_pad - z.shape[1])))     # (B, K_pad)

    vmem = pl.BlockSpec(memory_space=pltpu.MemorySpace.VMEM)
    flops = 2 * B * (k_pad * H_PAD + H_PAD * OUT_PAD)
    bytes_accessed = 4 * (z.size + w1.size + wo_p.size + bo_p.size + B * OUT_PAD)

    out = pl.pallas_call(
        _ped_muster_kernel,
        out_shape=jax.ShapeDtypeStruct((B, OUT_PAD), jnp.float32),
        in_specs=[vmem, vmem, vmem, vmem],
        out_specs=vmem,
        cost_estimate=pl.CostEstimate(
            flops=flops,
            transcendentals=B * OUT_PAD,
            bytes_accessed=bytes_accessed,
        ),
    )(z, w1, wo_p, bo_p)

    # drop padded class lanes (their probabilities are exactly 0 by construction)
    return out[:, :N_CLSS]


if __name__ == "__main__":
    # small shapes consistent with the JAAD pedMondel interface:
    #   x: keypoints (B, 4, frames, 19 joints)
    #   f: context / segmentation crop (B, 4, 16, 16)
    #   v: ego velocity (B, 2, frames)
    B, C_KP, T, J = 2, 4, 8, 19
    C_F, H, W = 4, 16, 16
    C_V = 2

    key = jax.random.PRNGKey(0)
    kx, kf, kv, kp = jax.random.split(key, 4)
    x = jax.random.normal(kx, (B, C_KP, T, J), jnp.float32)
    f = jax.random.normal(kf, (B, C_F, H, W), jnp.float32)
    v = jax.random.normal(kv, (B, C_V, T), jnp.float32)

    params = init_params(kp, d_x=C_KP * J, d_f=C_F * H * W, d_v=C_V * T)
    fused = prepare_params(params, n_frames=T)

    probs = jax.block_until_ready(muster_forward(x, f, v, fused))

    # sanity: softmax rows sum to 1 over the 3 real classes
    assert probs.shape == (B, N_CLSS)
    assert jnp.allclose(jnp.sum(probs, axis=1), 1.0, atol=1e-5)

    print("KERNEL_OK")
</pallas_src>

<mosaic_0001>
module attributes {stable_mosaic.version = 11 : i64} {
  func.func @_ped_muster_kernel(%arg0: memref<2x1664xf32, #tpu.memory_space<vmem>>, %arg1: memref<1664x128xf32, #tpu.memory_space<vmem>>, %arg2: memref<128x128xf32, #tpu.memory_space<vmem>>, %arg3: memref<1x128xf32, #tpu.memory_space<vmem>>, %arg4: memref<2x128xf32, #tpu.memory_space<vmem>>) attributes {dimension_semantics = [], scalar_prefetch = 0 : i64, scratch_operands = 0 : i64, tpu.core_type = #tpu.core_type<tc>} {
    %c0 = arith.constant 0 : index
    %c0_0 = arith.constant 0 : index
    %0 = vector.load %arg0[%c0, %c0_0] : memref<2x1664xf32, #tpu.memory_space<vmem>>, vector<2x1664xf32>
    %c0_1 = arith.constant 0 : index
    %c0_2 = arith.constant 0 : index
    %1 = vector.load %arg1[%c0_1, %c0_2] : memref<1664x128xf32, #tpu.memory_space<vmem>>, vector<1664x128xf32>
    %cst = arith.constant dense<0.000000e+00> : vector<2x128xf32>
    %2 = tpu.matmul %0, %1, %cst {dimension_numbers = #tpu.dot_dimension_numbers<[1], [0], [0], [1], [0, 0, 1, 1], [], []>} : vector<2x1664xf32>, vector<1664x128xf32>, vector<2x128xf32> -> vector<2x128xf32>
    %cst_3 = arith.constant 0.000000e+00 : f32
    %3 = vector.broadcast %cst_3 : f32 to vector<2x128xf32>
    %4 = arith.maximumf %2, %3 : vector<2x128xf32>
    %c0_4 = arith.constant 0 : index
    %c0_5 = arith.constant 0 : index
    %5 = vector.load %arg2[%c0_4, %c0_5] : memref<128x128xf32, #tpu.memory_space<vmem>>, vector<128x128xf32>
    %cst_6 = arith.constant dense<0.000000e+00> : vector<2x128xf32>
    %6 = tpu.matmul %4, %5, %cst_6 {dimension_numbers = #tpu.dot_dimension_numbers<[1], [0], [0], [1], [0, 0, 1, 1], [], []>} : vector<2x128xf32>, vector<128x128xf32>, vector<2x128xf32> -> vector<2x128xf32>
    %c0_7 = arith.constant 0 : index
    %c0_8 = arith.constant 0 : index
    %7 = vector.load %arg3[%c0_7, %c0_8] : memref<1x128xf32, #tpu.memory_space<vmem>>, vector<1x128xf32>
    %8 = vector.broadcast %7 : vector<1x128xf32> to vector<2x128xf32>
    %9 = arith.addf %6, %8 : vector<2x128xf32>
    %cst_9 = arith.constant dense<0xFF800000> : vector<2xf32>
    %10 = vector.multi_reduction <maximumf>, %9, %cst_9 [1] : vector<2x128xf32> to vector<2xf32>
    %11 = vector.shape_cast %10 : vector<2xf32> to vector<2x1xf32>
    %12 = vector.broadcast %11 : vector<2x1xf32> to vector<2x128xf32>
    %13 = arith.subf %9, %12 : vector<2x128xf32>
    %14 = math.exp %13 : vector<2x128xf32>
    %cst_10 = arith.constant dense<0.000000e+00> : vector<2xf32>
    %15 = vector.multi_reduction <add>, %14, %cst_10 [1] : vector<2x128xf32> to vector<2xf32>
    %16 = vector.shape_cast %15 : vector<2xf32> to vector<2x1xf32>
    %17 = vector.broadcast %16 : vector<2x1xf32> to vector<2x128xf32>
    %18 = arith.divf %14, %17 : vector<2x128xf32>
    %c0_11 = arith.constant 0 : index
    %c0_12 = arith.constant 0 : index
    %19 = vector.load %arg4[%c0_11, %c0_12] : memref<2x128xf32, #tpu.memory_space<vmem>>, vector<2x128xf32>
    tpu.vector_store %arg4[%c0_11, %c0_12], %18 {strides = array<i32>} : memref<2x128xf32, #tpu.memory_space<vmem>>, vector<2x128xf32>,
    return
  }
}

</mosaic_0001>

<bundles_post_ra>
// kernel: tpu_custom_call.1
= control target key start
LH: loop header
LB: loop body
LE: loop exit
PB: predicated region body
PF: predicated region fallthrough
CT: control target
= control target key end

     0   :  { %9 = vsyncpa [#allocation3], 0  ;;  %s1760_s0 = inlined_call_operand.hbm [shape: f32[2,1664], index: 0, kind: input, shape index: {}]   ;;  %s1761_s1 = inlined_call_operand.hbm [shape: f32[1664,128], index: 1, kind: input, shape index: {}]   ;;  %s1762_s2 = inlined_call_operand.hbm [shape: f32[128,128], index: 2, kind: input, shape index: {}]   ;;  %s1763_s3 = inlined_call_operand.vmem [shape: f32[1,128], index: 3, kind: input, shape index: {}]   ;;  %s1764_s4 = inlined_call_operand.hbm [shape: f32[2,128], index: 4, kind: output, shape index: {}]  }
   0x1   :  { %10 = vsyncpa [#allocation6], 0 }
   0x2   :  { %11 = vsyncpa [#allocation4], 0  ;;  %s1624_s15 = smov [#allocation5]   ;;  %s1530_s19 = scalar_lea.hbm %s1761_s1, 26624 }
   0x3   :  { %s27_s16 = sshll.u32 %s1624_s15, 4  ;;  %p1531_p0 = scmp.ne.s32.totalorder %s1761_s1, %s1530_s19  ;;  %s28_s16 = int_to_ptr.vmem [resolvable:$true] %s27_s16 }
   0x4   :  { %p1534_p1 = scmp.lt.u32.totalorder %s1530_s19, %s1761_s1 }
   0x6   :  { %p1536_p2 = pnand %p1534_p1, %p1531_p0 }
   0x8   :  { %1539 = shalt.err (!%p1536_p2)
}
   0x9   :  { %s1540_s24 = scalar_lea.vmem %s28_s16, 26624  ;;  %p1545_p4 = scmp.lt.s32.totalorder %s28_s16, %s28_s16 }
   0xa   :  { %p1541_p3 = scmp.ne.s32.totalorder %s28_s16, %s1540_s24  ;;  %p1546_p5 = scmp.lt.s32.totalorder %s1540_s24, %s1540_s24 }
   0xc   :  { %p1547_p6 = por %p1546_p5, %p1545_p4 }
   0xe   :  { %p1548_p7 = pnand %p1547_p6, %p1541_p3 }
  0x10   :  { %1551 = shalt.err (!%p1548_p7)
}
  0x11   :  { %s1625_s25 = smov 128   ;;  %s1626_s26 = smov 8  }
  0x12   :  { %33 = dma.hbm_to_vmem [thread:$0]  %s1761_s1, 26624, %s28_s16, [#allocation6], %s1625_s25, %s1625_s25, %s1626_s26  }
  0x13   :  { %s1627_s29 = smov [#allocation2]   ;;  %s1628_s5 = smov [#allocation7]  }
  0x14   :  { %s18_s30 = sshll.u32 %s1627_s29, 4  ;;  %s39_s6 = sshll.u32 %s1628_s5, 4  ;;  %s19_s30 = int_to_ptr.vmem [resolvable:$true] %s18_s30  ;;  %s40_s6 = int_to_ptr.vmem [resolvable:$true] %s39_s6 }
  0x15   :  { %s1552_s9 = scalar_lea.hbm %s1760_s0, 416 }
  0x16   :  { %p1553_p8 = scmp.ne.s32.totalorder %s1760_s0, %s1552_s9  ;;  %p1556_p9 = scmp.lt.u32.totalorder %s1552_s9, %s1760_s0 }
  0x18   :  { %p1558_p10 = pnand %p1556_p9, %p1553_p8 }
  0x1a   :  { %1561 = shalt.err (!%p1558_p10)
}
  0x1b   :  { %s1562_s1 = scalar_lea.vmem %s19_s30, 416  ;;  %p1567_p12 = scmp.lt.s32.totalorder %s19_s30, %s19_s30 }
  0x1c   :  { %p1563_p11 = scmp.ne.s32.totalorder %s19_s30, %s1562_s1  ;;  %p1568_p13 = scmp.lt.s32.totalorder %s1562_s1, %s1562_s1 }
  0x1e   :  { %p1569_p0 = por %p1568_p13, %p1567_p12 }
  0x20   :  { %p1570_p1 = pnand %p1569_p0, %p1563_p11 }
  0x22   :  { %1573 = shalt.err (!%p1570_p1)
}
  0x23   :  { %21 = dma.hbm_to_vmem [thread:$0]  %s1760_s0, 416, %s19_s30, [#allocation3]  }
  0x24   :  { %s1574_s18 = scalar_lea.hbm %s1762_s2, 2048 }
  0x25   :  { %p1575_p2 = scmp.ne.s32.totalorder %s1762_s2, %s1574_s18  ;;  %p1578_p3 = scmp.lt.u32.totalorder %s1574_s18, %s1762_s2 }
  0x27   :  { %p1580_p4 = pnand %p1578_p3, %p1575_p2 }
  0x29   :  { %1583 = shalt.err (!%p1580_p4)
}
  0x2a   :  { %s1584_s23 = scalar_lea.vmem %s40_s6, 2048  ;;  %p1589_p6 = scmp.lt.s32.totalorder %s40_s6, %s40_s6 }
  0x2b   :  { %p1585_p5 = scmp.ne.s32.totalorder %s40_s6, %s1584_s23  ;;  %p1590_p7 = scmp.lt.s32.totalorder %s1584_s23, %s1584_s23 }
  0x2d   :  { %p1591_p8 = por %p1590_p7, %p1589_p6 }
  0x2f   :  { %p1592_p9 = pnand %p1591_p8, %p1585_p5 }
  0x31   :  { %1595 = shalt.err (!%p1592_p9)
}
  0x32   :  { %45 = dma.hbm_to_vmem [thread:$0]  %s1762_s2, 2048, %s40_s6, [#allocation6], %s1625_s25, %s1625_s25, %s1626_s26  }
  0x33   :  { %1618 = dma.done.wait [#allocation3], 416  }
  0x34   :  { %1619 = vsyncadd [#allocation3], 4294966880 }
  0x35   :  { %1620 = dma.done.wait [#allocation6], 28672  }
  0x36   :  { %1621 = vsyncadd [#allocation6], 4294938624  ;;  %v77_v0 = vld [vmem:[#allocation5 + $0x80] sm:$0xff]  ;;  %v78_v1 = vld [vmem:[#allocation5 + $0x88] sm:$0xff]  ;;  %v1629_v47 = vmov 1983009808   ;;  %v277_v49 = vlaneseq }
  0x37   :  { %v109_v2 = vld [vmem:[#allocation5 + $0x180] sm:$0xff]  ;;  %v1273_v3 = vpack.c.bf16 %v78_v1, %v77_v0  ;;  %v110_v4 = vld [vmem:[#allocation5 + $0x188] sm:$0xff]  ;;  %v79_v11 = vld [vmem:[#allocation5 + $0x90] sm:$0xff]  ;;  %v275_v48 = vunpack.c.l.s4 %v1629_v47  ;;  %vm1631_vm0 = vmmov 0   ;;  %vm928_vm1 = vcmask 1041408   ;;  %s1633_s26 = smov [#allocation8]  }
  0x38   :  { %v61_v5 = vld [vmem:[#allocation5] sm:$0xff]  ;;  %v62_v6 = vld [vmem:[#allocation5 + $0x8] sm:$0xff]  ;;  %v1305_v7 = vpack.c.bf16 %v110_v4, %v109_v2  ;;  %v80_v13 = vld [vmem:[#allocation5 + $0x98] sm:$0xff]  ;;  %v278_v0 = vshrl.u32 %v277_v49, 7  ;;  %s947_s27 = sshll.u32 %s1633_s26, 4  ;;  %s948_s27 = int_to_ptr.vmem [resolvable:$true] %s947_s27 }
  0x39   :  { %v1275_v8 = vpack.c.bf16 %v62_v6, %v61_v5  ;;  %v93_v9 = vld [vmem:[#allocation5 + $0x100] sm:$0xff]  ;;  %v94_v10 = vld [vmem:[#allocation5 + $0x108] sm:$0xff]  ;;  %1274 = vmatprep.subr.bf16.mxu0 %v1273_v3  ;;  %v111_v14 = vld [vmem:[#allocation5 + $0x190] sm:$0xff]  ;;  %v1277_v16 = vpack.c.bf16 %v80_v13, %v79_v11  ;;  %v276_v63 = vunpack.c.0.s8 %v275_v48  ;;  %p1601_p11 = scmp.lt.s32.totalorder %s948_s27, %s948_s27 }
  0x3a   :  { %v1307_v12 = vpack.c.bf16 %v94_v10, %v93_v9  ;;  %v112_v15 = vld [vmem:[#allocation5 + $0x198] sm:$0xff]  ;;  %1306 = vmatprep.subr.bf16.mxu1 %v1305_v7  ;;  %v63_v18 = vld [vmem:[#allocation5 + $0x10] sm:$0xff]  ;;  %v81_v23 = vld [vmem:[#allocation5 + $0xa0] sm:$0xff] }
  0x3b   :  { %1276 = vmatpush3.bf16.msra.mxu0 %v1275_v8  ;;  %v1309_v17 = vpack.c.bf16 %v112_v15, %v111_v14  ;;  %v64_v19 = vld [vmem:[#allocation5 + $0x18] sm:$0xff]  ;;  %v95_v20 = vld [vmem:[#allocation5 + $0x110] sm:$0xff]  ;;  %v82_v24 = vld [vmem:[#allocation5 + $0xa8] sm:$0xff]  ;;  %v1701_v13 = vsub.s32 %v276_v63, %v278_v0 }
  0x3c   :  { %1308 = vmatpush3.bf16.msra.mxu1 %v1307_v12  ;;  %v1279_v21 = vpack.c.bf16 %v64_v19, %v63_v18  ;;  %v96_v22 = vld [vmem:[#allocation5 + $0x118] sm:$0xff]  ;;  %1278 = vmatprep.subr.bf16.mxu0 %v1277_v16  ;;  %v1281_v26 = vpack.c.bf16 %v82_v24, %v81_v23  ;;  %v113_v27 = vld [vmem:[#allocation5 + $0x1a0] sm:$0xff]  ;;  %v114_v28 = vld [vmem:[#allocation5 + $0x1a8] sm:$0xff] }
  0x3d   :  { %1310 = vmatprep.subr.bf16.mxu1 %v1309_v17  ;;  %v1311_v25 = vpack.c.bf16 %v96_v22, %v95_v20  ;;  %v65_v29 = vld [vmem:[#allocation5 + $0x20] sm:$0xff]  ;;  %v1313_v30 = vpack.c.bf16 %v114_v28, %v113_v27  ;;  %v66_v31 = vld [vmem:[#allocation5 + $0x28] sm:$0xff]  ;;  %v83_v35 = vld [vmem:[#allocation5 + $0xb0] sm:$0xff] }
  0x3e   :  { %v97_v32 = vld [vmem:[#allocation5 + $0x120] sm:$0xff]  ;;  %v98_v33 = vld [vmem:[#allocation5 + $0x128] sm:$0xff]  ;;  %v1283_v34 = vpack.c.bf16 %v66_v31, %v65_v29  ;;  %v84_v36 = vld [vmem:[#allocation5 + $0xb8] sm:$0xff] }
  0x3f   :  { %1280 = vmatpush3.bf16.msra.mxu0 %v1279_v21  ;;  %v115_v37 = vld [vmem:[#allocation5 + $0x1b0] sm:$0xff]  ;;  %v1315_v38 = vpack.c.bf16 %v98_v33, %v97_v32  ;;  %v1285_v39 = vpack.c.bf16 %v84_v36, %v83_v35  ;;  %v116_v40 = vld [vmem:[#allocation5 + $0x1b8] sm:$0xff]  ;;  %v85_v46 = vld [vmem:[#allocation5 + $0xc0] sm:$0xff] }
  0x40   :  { %1312 = vmatpush3.bf16.msra.mxu1 %v1311_v25  ;;  %1282 = vmatprep.subr.bf16.mxu0 %v1281_v26  ;;  %v67_v41 = vld [vmem:[#allocation5 + $0x30] sm:$0xff]  ;;  %v68_v42 = vld [vmem:[#allocation5 + $0x38] sm:$0xff]  ;;  %v1317_v43 = vpack.c.bf16 %v116_v40, %v115_v37  ;;  %v86_v50 = vld [vmem:[#allocation5 + $0xc8] sm:$0xff] }
  0x41   :  { %1314 = vmatprep.subr.bf16.mxu1 %v1313_v30  ;;  %v99_v44 = vld [vmem:[#allocation5 + $0x130] sm:$0xff]  ;;  %v100_v45 = vld [vmem:[#allocation5 + $0x138] sm:$0xff]  ;;  %v117_v51 = vld [vmem:[#allocation5 + $0x1c0] sm:$0xff]  ;;  %v1287_v53 = vpack.c.bf16 %v68_v42, %v67_v41  ;;  %v1289_v55 = vpack.c.bf16 %v86_v50, %v85_v46 }
  0x42   :  { %v118_v52 = vld [vmem:[#allocation5 + $0x1c8] sm:$0xff]  ;;  %v1319_v54 = vpack.c.bf16 %v100_v45, %v99_v44  ;;  %v69_v56 = vld [vmem:[#allocation5 + $0x40] sm:$0xff]  ;;  %v87_v61 = vld [vmem:[#allocation5 + $0xd0] sm:$0xff] }
  0x43   :  { %1284 = vmatpush3.bf16.msra.mxu0 %v1283_v34  ;;  %v70_v57 = vld [vmem:[#allocation5 + $0x48] sm:$0xff]  ;;  %v101_v58 = vld [vmem:[#allocation5 + $0x140] sm:$0xff]  ;;  %v1321_v59 = vpack.c.bf16 %v118_v52, %v117_v51  ;;  %v88_v62 = vld [vmem:[#allocation5 + $0xd8] sm:$0xff] }
  0x44   :  { %1316 = vmatpush3.bf16.msra.mxu1 %v1315_v38  ;;  %1286 = vmatprep.subr.bf16.mxu0 %v1285_v39  ;;  %v102_v60 = vld [vmem:[#allocation5 + $0x148] sm:$0xff]  ;;  %v119_v1 = vld [vmem:[#allocation5 + $0x1d0] sm:$0xff]  ;;  %v120_v2 = vld [vmem:[#allocation5 + $0x1d8] sm:$0xff]  ;;  %v1291_v3 = vpack.c.bf16 %v70_v57, %v69_v56  ;;  %v1293_v5 = vpack.c.bf16 %v88_v62, %v87_v61 }
  0x45   :  { %1318 = vmatprep.subr.bf16.mxu1 %v1317_v43  ;;  %v1323_v4 = vpack.c.bf16 %v102_v60, %v101_v58  ;;  %v71_v6 = vld [vmem:[#allocation5 + $0x50] sm:$0xff]  ;;  %v72_v7 = vld [vmem:[#allocation5 + $0x58] sm:$0xff]  ;;  %v1325_v9 = vpack.c.bf16 %v120_v2, %v119_v1  ;;  %v89_v11 = vld [vmem:[#allocation5 + $0xe0] sm:$0xff] }
  0x46   :  { %v103_v8 = vld [vmem:[#allocation5 + $0x150] sm:$0xff]  ;;  %v104_v10 = vld [vmem:[#allocation5 + $0x158] sm:$0xff]  ;;  %v90_v12 = vld [vmem:[#allocation5 + $0xe8] sm:$0xff]  ;;  %v1295_v16 = vpack.c.bf16 %v72_v7, %v71_v6 }
  0x47   :  { %1288 = vmatpush3.bf16.msra.mxu0 %v1287_v53  ;;  %v121_v14 = vld [vmem:[#allocation5 + $0x1e0] sm:$0xff]  ;;  %v122_v15 = vld [vmem:[#allocation5 + $0x1e8] sm:$0xff]  ;;  %v1327_v18 = vpack.c.bf16 %v104_v10, %v103_v8  ;;  %v1297_v19 = vpack.c.bf16 %v90_v12, %v89_v11  ;;  %v91_v25 = vld [vmem:[#allocation5 + $0xf0] sm:$0xff] }
  0x48   :  { %1320 = vmatpush3.bf16.msra.mxu1 %v1319_v54  ;;  %1290 = vmatprep.subr.bf16.mxu0 %v1289_v55  ;;  %v73_v17 = vld [vmem:[#allocation5 + $0x60] sm:$0xff]  ;;  %v74_v20 = vld [vmem:[#allocation5 + $0x68] sm:$0xff]  ;;  %v1329_v23 = vpack.c.bf16 %v122_v15, %v121_v14  ;;  %v92_v26 = vld [vmem:[#allocation5 + $0xf8] sm:$0xff] }
  0x49   :  { %1322 = vmatprep.subr.bf16.mxu1 %v1321_v59  ;;  %v105_v21 = vld [vmem:[#allocation5 + $0x160] sm:$0xff]  ;;  %v106_v24 = vld [vmem:[#allocation5 + $0x168] sm:$0xff]  ;;  %v123_v29 = vld [vmem:[#allocation5 + $0x1f0] sm:$0xff]  ;;  %v1299_v31 = vpack.c.bf16 %v74_v20, %v73_v17  ;;  %v1301_v35 = vpack.c.bf16 %v92_v26, %v91_v25 }
  0x4a   :  { %v57_v22 = vld [vmem:[#allocation2] sm:$0xff]  ;;  %v124_v30 = vld [vmem:[#allocation5 + $0x1f8] sm:$0xff]  ;;  %v1331_v34 = vpack.c.bf16 %v106_v24, %v105_v21  ;;  %v75_v36 = vld [vmem:[#allocation5 + $0x70] sm:$0xff] }
  0x4b   :  { %1292 = vmatpush3.bf16.msra.mxu0 %v1291_v3  ;;  %v280_v27 = vrot.slane %v57_v22, %v1701_v13  ;;  %v273_v28 = vcombine.high %v57_v22, %v57_v22  ;;  %v76_v37 = vld [vmem:[#allocation5 + $0x78] sm:$0xff]  ;;  %v107_v38 = vld [vmem:[#allocation5 + $0x170] sm:$0xff]  ;;  %v1333_v39 = vpack.c.bf16 %v124_v30, %v123_v29  ;;  %v141_v42 = vld [vmem:[#allocation5 + $0x280] sm:$0xff] }
  0x4c   :  { %1324 = vmatpush3.bf16.msra.mxu1 %v1323_v4  ;;  %1294 = vmatprep.subr.bf16.mxu0 %v1293_v5  ;;  %v108_v40 = vld [vmem:[#allocation5 + $0x178] sm:$0xff]  ;;  %v142_v43 = vld [vmem:[#allocation5 + $0x288] sm:$0xff]  ;;  %v173_v44 = vld [vmem:[#allocation5 + $0x380] sm:$0xff]  ;;  %v1303_v46 = vpack.c.bf16 %v76_v37, %v75_v36 }
  0x4d   :  { %1326 = vmatprep.subr.bf16.mxu1 %v1325_v9  ;;  %v288_v32 = vcombine.high %v280_v27, %v280_v27  ;;  %v287_v33 = vrot.slane %v273_v28, %v1701_v13  ;;  %v174_v45 = vld [vmem:[#allocation5 + $0x388] sm:$0xff]  ;;  %v1335_v47 = vpack.c.bf16 %v108_v40, %v107_v38  ;;  %v1337_v48 = vpack.c.bf16 %v142_v43, %v141_v42  ;;  %v125_v49 = vld [vmem:[#allocation5 + $0x200] sm:$0xff]  ;;  %v143_v54 = vld [vmem:[#allocation5 + $0x290] sm:$0xff] }
  0x4e   :  { %v126_v50 = vld [vmem:[#allocation5 + $0x208] sm:$0xff]  ;;  %v157_v51 = vld [vmem:[#allocation5 + $0x300] sm:$0xff]  ;;  %v1369_v52 = vpack.c.bf16 %v174_v45, %v173_v44  ;;  %v144_v55 = vld [vmem:[#allocation5 + $0x298] sm:$0xff] }
  0x4f   :  { %1296 = vmatpush3.bf16.msra.mxu0 %v1295_v16  ;;  %408 = vmatprep.mubr.f32.mxu0 %v288_v32  ;;  %v289_v41 = vcombine.high %v287_v33, %v287_v33  ;;  %v158_v53 = vld [vmem:[#allocation5 + $0x308] sm:$0xff]  ;;  %v175_v56 = vld [vmem:[#allocation5 + $0x390] sm:$0xff]  ;;  %v176_v57 = vld [vmem:[#allocation5 + $0x398] sm:$0xff]  ;;  %v1339_v58 = vpack.c.bf16 %v126_v50, %v125_v49  ;;  %v1341_v60 = vpack.c.bf16 %v144_v55, %v143_v54 }
  0x50   :  { %1328 = vmatpush3.bf16.msra.mxu1 %v1327_v18  ;;  %1298 = vmatprep.subr.bf16.mxu0 %v1297_v19  ;;  %v1371_v59 = vpack.c.bf16 %v158_v53, %v157_v51  ;;  %v127_v61 = vld [vmem:[#allocation5 + $0x210] sm:$0xff]  ;;  %v128_v62 = vld [vmem:[#allocation5 + $0x218] sm:$0xff]  ;;  %v1373_v0 = vpack.c.bf16 %v176_v57, %v175_v56  ;;  %v145_v2 = vld [vmem:[#allocation5 + $0x2a0] sm:$0xff] }
  0x51   :  { %1330 = vmatprep.subr.bf16.mxu1 %v1329_v23  ;;  %478 = vmatprep.mubr.f32.mxu1 %v289_v41  ;;  %v159_v63 = vld [vmem:[#allocation5 + $0x310] sm:$0xff]  ;;  %v160_v1 = vld [vmem:[#allocation5 + $0x318] sm:$0xff]  ;;  %v146_v3 = vld [vmem:[#allocation5 + $0x2a8] sm:$0xff]  ;;  %v1343_v6 = vpack.c.bf16 %v128_v62, %v127_v61 }
  0x52   :  { %v177_v4 = vld [vmem:[#allocation5 + $0x3a0] sm:$0xff]  ;;  %v178_v5 = vld [vmem:[#allocation5 + $0x3a8] sm:$0xff]  ;;  %v1375_v7 = vpack.c.bf16 %v160_v1, %v159_v63  ;;  %v1345_v8 = vpack.c.bf16 %v146_v3, %v145_v2  ;;  %v147_v15 = vld [vmem:[#allocation5 + $0x2b0] sm:$0xff] }
  0x53   :  { %1300 = vmatpush3.bf16.msra.mxu0 %v1299_v31  ;;  %v129_v9 = vld [vmem:[#allocation5 + $0x220] sm:$0xff]  ;;  %v130_v10 = vld [vmem:[#allocation5 + $0x228] sm:$0xff]  ;;  %v1377_v12 = vpack.c.bf16 %v178_v5, %v177_v4  ;;  %v148_v16 = vld [vmem:[#allocation5 + $0x2b8] sm:$0xff] }
  0x54   :  { %1332 = vmatpush3.bf16.msra.mxu1 %v1331_v34  ;;  %1302 = vmatprep.subr.bf16.mxu0 %v1301_v35  ;;  %v161_v11 = vld [vmem:[#allocation5 + $0x320] sm:$0xff]  ;;  %v162_v14 = vld [vmem:[#allocation5 + $0x328] sm:$0xff]  ;;  %v179_v17 = vld [vmem:[#allocation5 + $0x3b0] sm:$0xff]  ;;  %v1347_v19 = vpack.c.bf16 %v130_v10, %v129_v9  ;;  %v1349_v22 = vpack.c.bf16 %v148_v16, %v147_v15 }
  0x55   :  { %1334 = vmatprep.subr.bf16.mxu1 %v1333_v39  ;;  %v180_v18 = vld [vmem:[#allocation5 + $0x3b8] sm:$0xff]  ;;  %v131_v20 = vld [vmem:[#allocation5 + $0x230] sm:$0xff]  ;;  %v1379_v21 = vpack.c.bf16 %v162_v14, %v161_v11  ;;  %v150_v28 = vld [vmem:[#allocation5 + $0x2c8] sm:$0xff] }
  0x56   :  { %v132_v23 = vld [vmem:[#allocation5 + $0x238] sm:$0xff]  ;;  %v163_v24 = vld [vmem:[#allocation5 + $0x330] sm:$0xff]  ;;  %v1381_v26 = vpack.c.bf16 %v180_v18, %v179_v17  ;;  %v181_v30 = vld [vmem:[#allocation5 + $0x3c0] sm:$0xff] }
  0x57   :  { %1304 = vmatpush3.bf16.msra.mxu0 %v1303_v46  ;;  %v164_v25 = vld [vmem:[#allocation5 + $0x338] sm:$0xff]  ;;  %v58_v29 = vld [vmem:[#allocation2 + $0x8] sm:$0xff]  ;;  %v1351_v34 = vpack.c.bf16 %v132_v23, %v131_v20  ;;  %v133_v37 = vld [vmem:[#allocation5 + $0x240] sm:$0xff] }
  0x58   :  { %1336 = vmatpush3.bf16.msra.mxu1 %v1335_v47  ;;  %1338 = vmatprep.subr.bf16.mxu0 %v1337_v48  ;;  %v182_v31 = vld [vmem:[#allocation5 + $0x3c8] sm:$0xff]  ;;  %v1706_v32 = vrot.slane %v58_v29, %v1701_v13  ;;  %v1383_v35 = vpack.c.bf16 %v164_v25, %v163_v24  ;;  %v165_v39 = vld [vmem:[#allocation5 + $0x340] sm:$0xff]  ;;  %v151_v44 = vld [vmem:[#allocation5 + $0x2d0] sm:$0xff] }
  0x59   :  { %1370 = vmatprep.subr.bf16.mxu1 %v1369_v52  ;;  %v134_v38 = vld [vmem:[#allocation5 + $0x248] sm:$0xff]  ;;  %v1385_v42 = vpack.c.bf16 %v182_v31, %v181_v30  ;;  %v152_v45 = vld [vmem:[#allocation5 + $0x2d8] sm:$0xff]  ;;  %v183_v46 = vld [vmem:[#allocation5 + $0x3d0] sm:$0xff] }
  0x5a   :  { %409 = vmatmul.mubr.f32.vlgmr.msra.gmra.mrb[0].mxu0 %v280_v27  ;;  %v149_v27 = vld [vmem:[#allocation5 + $0x2c0] sm:$0xff]  ;;  %v305_v40 = vcombine.high %v1706_v32, %v1706_v32  ;;  %v166_v43 = vld [vmem:[#allocation5 + $0x348] sm:$0xff]  ;;  %v184_v47 = vld [vmem:[#allocation5 + $0x3d8] sm:$0xff]  ;;  %v1355_v49 = vpack.c.bf16 %v134_v38, %v133_v37  ;;  %v1357_v51 = vpack.c.bf16 %v152_v45, %v151_v44 }
  0x5b   :  { %479 = vmatmul.mubr.f32.vlgmr.msra.gmra.mrb[0].mxu1 %v287_v33  ;;  %1340 = vmatpush3.bf16.msra.mxu0 %v1339_v58  ;;  %v290_v33 = vcombine.high %v58_v29, %v58_v29  ;;  %v1353_v36 = vpack.c.bf16 %v150_v28, %v149_v27  ;;  %v1387_v50 = vpack.c.bf16 %v166_v43, %v165_v39  ;;  %v135_v52 = vld [vmem:[#allocation5 + $0x250] sm:$0xff]  ;;  %v136_v53 = vld [vmem:[#allocation5 + $0x258] sm:$0xff]  ;;  %v153_v57 = vld [vmem:[#allocation5 + $0x2e0] sm:$0xff] }
  0x5c   :  { %1372 = vmatpush3.bf16.msra.mxu1 %v1371_v59  ;;  %1342 = vmatprep.subr.bf16.mxu0 %v1341_v60  ;;  %v167_v54 = vld [vmem:[#allocation5 + $0x350] sm:$0xff]  ;;  %v1389_v55 = vpack.c.bf16 %v184_v47, %v183_v46  ;;  %v168_v56 = vld [vmem:[#allocation5 + $0x358] sm:$0xff]  ;;  %v154_v58 = vld [vmem:[#allocation5 + $0x2e8] sm:$0xff]  ;;  %v1359_v61 = vpack.c.bf16 %v136_v53, %v135_v52 }
  0x5d   :  { %1374 = vmatprep.subr.bf16.mxu1 %v1373_v0  ;;  %v1711_v41 = vrot.slane %v290_v33, %v1701_v13  ;;  %548 = vmatprep.mubr.f32.mxu0 %v305_v40  ;;  %v185_v59 = vld [vmem:[#allocation5 + $0x3e0] sm:$0xff]  ;;  %v186_v60 = vld [vmem:[#allocation5 + $0x3e8] sm:$0xff]  ;;  %v1391_v62 = vpack.c.bf16 %v168_v56, %v167_v54  ;;  %v1361_v63 = vpack.c.bf16 %v154_v58, %v153_v57  ;;  %v155_v5 = vld [vmem:[#allocation5 + $0x2f0] sm:$0xff] }
  0x5e   :  { %v137_v0 = vld [vmem:[#allocation5 + $0x260] sm:$0xff]  ;;  %v138_v1 = vld [vmem:[#allocation5 + $0x268] sm:$0xff]  ;;  %v1393_v3 = vpack.c.bf16 %v186_v60, %v185_v59  ;;  %v140_v14 = vld [vmem:[#allocation5 + $0x278] sm:$0xff] }
  0x5f   :  { %1344 = vmatpush3.bf16.msra.mxu0 %v1343_v6  ;;  %v306_v48 = vcombine.high %v1711_v41, %v1711_v41  ;;  %v169_v2 = vld [vmem:[#allocation5 + $0x360] sm:$0xff]  ;;  %v170_v4 = vld [vmem:[#allocation5 + $0x368] sm:$0xff]  ;;  %v156_v6 = vld [vmem:[#allocation5 + $0x2f8] sm:$0xff]  ;;  %v1363_v9 = vpack.c.bf16 %v138_v1, %v137_v0 }
  0x60   :  { %1376 = vmatpush3.bf16.msra.mxu1 %v1375_v7  ;;  %1346 = vmatprep.subr.bf16.mxu0 %v1345_v8  ;;  %v187_v7 = vld [vmem:[#allocation5 + $0x3f0] sm:$0xff]  ;;  %v188_v8 = vld [vmem:[#allocation5 + $0x3f8] sm:$0xff]  ;;  %v1395_v10 = vpack.c.bf16 %v170_v4, %v169_v2  ;;  %v1365_v11 = vpack.c.bf16 %v156_v6, %v155_v5  ;;  %v205_v18 = vld [vmem:[#allocation5 + $0x480] sm:$0xff] }
  0x61   :  { %1378 = vmatprep.subr.bf16.mxu1 %v1377_v12  ;;  %618 = vmatprep.mubr.f32.mxu1 %v306_v48  ;;  %v139_v12 = vld [vmem:[#allocation5 + $0x270] sm:$0xff]  ;;  %v1397_v16 = vpack.c.bf16 %v188_v8, %v187_v7  ;;  %v172_v17 = vld [vmem:[#allocation5 + $0x378] sm:$0xff]  ;;  %v237_v20 = vld [vmem:[#allocation5 + $0x580] sm:$0xff] }
  0x62   :  { %v171_v15 = vld [vmem:[#allocation5 + $0x370] sm:$0xff]  ;;  %v189_v23 = vld [vmem:[#allocation5 + $0x400] sm:$0xff]  ;;  %v222_v28 = vld [vmem:[#allocation5 + $0x508] sm:$0xff] }
  0x63   :  { %1348 = vmatpush3.bf16.msra.mxu0 %v1347_v19  ;;  %v206_v19 = vld [vmem:[#allocation5 + $0x488] sm:$0xff]  ;;  %v1399_v24 = vpack.c.bf16 %v172_v17, %v171_v15  ;;  %v221_v27 = vld [vmem:[#allocation5 + $0x500] sm:$0xff]  ;;  %v207_v30 = vld [vmem:[#allocation5 + $0x490] sm:$0xff] }
  0x64   :  { %1380 = vmatpush3.bf16.msra.mxu1 %v1379_v21  ;;  %1350 = vmatprep.subr.bf16.mxu0 %v1349_v22  ;;  %v238_v21 = vld [vmem:[#allocation5 + $0x588] sm:$0xff]  ;;  %v1367_v22 = vpack.c.bf16 %v140_v14, %v139_v12  ;;  %v1401_v25 = vpack.c.bf16 %v206_v19, %v205_v18  ;;  %v208_v31 = vld [vmem:[#allocation5 + $0x498] sm:$0xff]  ;;  %v239_v33 = vld [vmem:[#allocation5 + $0x590] sm:$0xff] }
  0x65   :  { %1382 = vmatprep.subr.bf16.mxu1 %v1381_v26  ;;  %v190_v26 = vld [vmem:[#allocation5 + $0x408] sm:$0xff]  ;;  %v1433_v29 = vpack.c.bf16 %v238_v21, %v237_v20  ;;  %v59_v37 = vld [vmem:[#allocation2 + $0x10] sm:$0xff]  ;;  %v1405_v38 = vpack.c.bf16 %v208_v31, %v207_v30  ;;  %v209_v47 = vld [vmem:[#allocation5 + $0x4a0] sm:$0xff] }
  0x66   :  { %v191_v39 = vld [vmem:[#allocation5 + $0x410] sm:$0xff]  ;;  %v192_v40 = vld [vmem:[#allocation5 + $0x418] sm:$0xff]  ;;  %v1716_v43 = vrot.slane %v59_v37, %v1701_v13  ;;  %v307_v44 = vcombine.high %v59_v37, %v59_v37  ;;  %v210_v48 = vld [vmem:[#allocation5 + $0x4a8] sm:$0xff] }
  0x67   :  { %1352 = vmatpush3.bf16.msra.mxu0 %v1351_v34  ;;  %v240_v34 = vld [vmem:[#allocation5 + $0x598] sm:$0xff]  ;;  %v1407_v53 = vpack.c.bf16 %v192_v40, %v191_v39  ;;  %v193_v56 = vld [vmem:[#allocation5 + $0x420] sm:$0xff]  ;;  %v194_v57 = vld [vmem:[#allocation5 + $0x428] sm:$0xff] }
  0x68   :  { %1384 = vmatpush3.bf16.msra.mxu1 %v1383_v35  ;;  %1354 = vmatprep.subr.bf16.mxu0 %v1353_v36  ;;  %v1403_v35 = vpack.c.bf16 %v190_v26, %v189_v23  ;;  %v1435_v36 = vpack.c.bf16 %v222_v28, %v221_v27  ;;  %v1437_v45 = vpack.c.bf16 %v240_v34, %v239_v33  ;;  %v224_v46 = vld [vmem:[#allocation5 + $0x518] sm:$0xff]  ;;  %v225_v58 = vld [vmem:[#allocation5 + $0x520] sm:$0xff]  ;;  %v226_v60 = vld [vmem:[#allocation5 + $0x528] sm:$0xff] }
  0x69   :  { %1386 = vmatprep.subr.bf16.mxu1 %v1385_v42  ;;  %v223_v42 = vld [vmem:[#allocation5 + $0x510] sm:$0xff]  ;;  %v1722_v52 = vrot.slane %v307_v44, %v1701_v13  ;;  %v212_v13 = vld [vmem:[#allocation5 + $0x4b8] sm:$0xff]  ;;  %v1443_v0 = vpack.c.bf16 %v226_v60, %v225_v58  ;;  %v213_v7 = vld [vmem:[#allocation5 + $0x4c0] sm:$0xff] }
  0x6a   :  { %v1439_v54 = vpack.c.bf16 %v224_v46, %v223_v42  ;;  %v195_v2 = vld [vmem:[#allocation5 + $0x430] sm:$0xff]  ;;  %v228_v6 = vld [vmem:[#allocation5 + $0x538] sm:$0xff]  ;;  %v214_v8 = vld [vmem:[#allocation5 + $0x4c8] sm:$0xff] }
  0x6b   :  { %1356 = vmatpush3.bf16.msra.mxu0 %v1355_v49  ;;  %v241_v49 = vld [vmem:[#allocation5 + $0x5a0] sm:$0xff]  ;;  %v227_v4 = vld [vmem:[#allocation5 + $0x530] sm:$0xff]  ;;  %v1417_v14 = vpack.c.bf16 %v214_v8, %v213_v7  ;;  %v230_v19 = vld [vmem:[#allocation5 + $0x548] sm:$0xff] }
  0x6c   :  { %1388 = vmatpush3.bf16.msra.mxu1 %v1387_v50  ;;  %1358 = vmatprep.subr.bf16.mxu0 %v1357_v51  ;;  %v242_v50 = vld [vmem:[#allocation5 + $0x5a8] sm:$0xff]  ;;  %v322_v51 = vcombine.high %v1716_v43, %v1716_v43  ;;  %v1447_v12 = vpack.c.bf16 %v228_v6, %v227_v4  ;;  %v197_v15 = vld [vmem:[#allocation5 + $0x440] sm:$0xff]  ;;  %v215_v20 = vld [vmem:[#allocation5 + $0x4d0] sm:$0xff]  ;;  %v1632_v4 = vmov 0.0  }
  0x6d   :  { %1390 = vmatprep.subr.bf16.mxu1 %v1389_v55  ;;  %v1409_v55 = vpack.c.bf16 %v210_v48, %v209_v47  ;;  %v1441_v59 = vpack.c.bf16 %v242_v50, %v241_v49  ;;  %v229_v17 = vld [vmem:[#allocation5 + $0x540] sm:$0xff]  ;;  %v216_v21 = vld [vmem:[#allocation5 + $0x4d8] sm:$0xff]  ;;  %v199_v27 = vld [vmem:[#allocation5 + $0x450] sm:$0xff] }
  0x6e   :  { %v248_v23 = vld [vmem:[#allocation5 + $0x5d8] sm:$0xff]  ;;  %v1421_v26 = vpack.c.bf16 %v216_v21, %v215_v20  ;;  %v217_v33 = vld [vmem:[#allocation5 + $0x4e0] sm:$0xff]  ;;  %v218_v34 = vld [vmem:[#allocation5 + $0x4e8] sm:$0xff] }
  0x6f   :  { %1360 = vmatpush3.bf16.msra.mxu0 %v1359_v61  ;;  %v211_v61 = vld [vmem:[#allocation5 + $0x4b0] sm:$0xff]  ;;  %v200_v28 = vld [vmem:[#allocation5 + $0x458] sm:$0xff]  ;;  %v1425_v39 = vpack.c.bf16 %v218_v34, %v217_v33  ;;  %v201_v40 = vld [vmem:[#allocation5 + $0x460] sm:$0xff] }
  0x70   :  { %1392 = vmatpush3.bf16.msra.mxu1 %v1391_v62  ;;  %1362 = vmatprep.subr.bf16.mxu0 %v1361_v63  ;;  %v243_v62 = vld [vmem:[#allocation5 + $0x5b0] sm:$0xff]  ;;  %v244_v63 = vld [vmem:[#allocation5 + $0x5b8] sm:$0xff]  ;;  %v1413_v1 = vpack.c.bf16 %v212_v13, %v211_v61  ;;  %v1423_v37 = vpack.c.bf16 %v200_v28, %v199_v27  ;;  %v202_v42 = vld [vmem:[#allocation5 + $0x468] sm:$0xff] }
  0x71   :  { %1394 = vmatprep.subr.bf16.mxu1 %v1393_v3  ;;  %v196_v3 = vld [vmem:[#allocation5 + $0x438] sm:$0xff]  ;;  %v1445_v5 = vpack.c.bf16 %v244_v63, %v243_v62  ;;  %v233_v44 = vld [vmem:[#allocation5 + $0x560] sm:$0xff]  ;;  %v234_v46 = vld [vmem:[#allocation5 + $0x568] sm:$0xff]  ;;  %v1630_v63 = vmov 0.0|0.0  }
  0x72   :  { %v232_v31 = vld [vmem:[#allocation5 + $0x558] sm:$0xff]  ;;  %v219_v47 = vld [vmem:[#allocation5 + $0x4f0] sm:$0xff]  ;;  %v253_v61 = vld [vmem:[#allocation5 + $0x600] sm:$0xff] }
  0x73   :  { %1364 = vmatpush3.bf16.msra.mxu0 %v1363_v9  ;;  %v245_v9 = vld [vmem:[#allocation5 + $0x5c0] sm:$0xff]  ;;  %v220_v48 = vld [vmem:[#allocation5 + $0x4f8] sm:$0xff]  ;;  %v251_v49 = vld [vmem:[#allocation5 + $0x5f0] sm:$0xff] }
  0x74   :  { %1396 = vmatpush3.bf16.msra.mxu1 %v1395_v10  ;;  %1366 = vmatprep.subr.bf16.mxu0 %v1365_v11  ;;  %v246_v10 = vld [vmem:[#allocation5 + $0x5c8] sm:$0xff]  ;;  %v1415_v11 = vpack.c.bf16 %v196_v3, %v195_v2  ;;  %v252_v50 = vld [vmem:[#allocation5 + $0x5f8] sm:$0xff]  ;;  %v235_v58 = vld [vmem:[#allocation5 + $0x570] sm:$0xff] }
  0x75   :  { %1398 = vmatprep.subr.bf16.mxu1 %v1397_v16  ;;  %v198_v16 = vld [vmem:[#allocation5 + $0x448] sm:$0xff]  ;;  %v1449_v18 = vpack.c.bf16 %v246_v10, %v245_v9  ;;  %v257_v2 = vld [vmem:[#allocation5 + $0x620] sm:$0xff]  ;;  %v259_v6 = vld [vmem:[#allocation5 + $0x630] sm:$0xff] }
  0x76   :  { %v254_v13 = vld [vmem:[#allocation5 + $0x608] sm:$0xff]  ;;  %v260_v7 = vld [vmem:[#allocation5 + $0x638] sm:$0xff]  ;;  %v263_v10 = vld [vmem:[#allocation5 + $0x650] sm:$0xff] }
  0x77   :  { %1368 = vmatpush3.bf16.msra.mxu0 %v1367_v22  ;;  %v247_v22 = vld [vmem:[#allocation5 + $0x5d0] sm:$0xff]  ;;  %v1466_v62 = vpack.c.bf16 %v254_v13, %v253_v61  ;;  %v258_v3 = vld [vmem:[#allocation5 + $0x628] sm:$0xff]  ;;  %v957_v20 = vld.sshfl [vmem:[#allocation2 + $0x18] sm:$0x3 pattern:$0x76325410] }
  0x78   :  { %1400 = vmatpush3.bf16.msra.mxu1 %v1399_v24  ;;  %1402 = vmatprep.subr.bf16.mxu0 %v1401_v25  ;;  %v1419_v24 = vpack.c.bf16 %v198_v16, %v197_v15  ;;  %v1451_v25 = vpack.c.bf16 %v230_v19, %v229_v17  ;;  %v1453_v30 = vpack.c.bf16 %v248_v23, %v247_v22  ;;  %v262_v8 = vld [vmem:[#allocation5 + $0x648] sm:$0xff]  ;;  %v267_v17 = vld [vmem:[#allocation5 + $0x670] sm:$0xff]  ;;  %v835_v21 = vld [vmem:[#allocation7] sm:$0xff] }
  0x79   :  { %1434 = vmatprep.subr.bf16.mxu1 %v1433_v29  ;;  %v231_v29 = vld [vmem:[#allocation5 + $0x550] sm:$0xff]  ;;  %v266_v15 = vld [vmem:[#allocation5 + $0x668] sm:$0xff]  ;;  %v839_v27 = vld [vmem:[#allocation7 + $0x20] sm:$0xff] }
  0x7a   :  { %549 = vmatmul.mubr.f32.vlgmr.msra.gmra.mrb[2].mxu0 %v1706_v32  ;;  %v323_v32 = vcombine.high %v1722_v52, %v1722_v52  ;;  %v836_v22 = vld [vmem:[#allocation7 + $0x8] sm:$0xff]  ;;  %v837_v23 = vld [vmem:[#allocation7 + $0x10] sm:$0xff]  ;;  %v843_v34 = vld [vmem:[#allocation7 + $0x40] sm:$0xff] }
  0x7b   :  { %1404 = vmatpush3.bf16.msra.mxu0 %v1403_v35  ;;  %619 = vmatmul.mubr.f32.vlgmr.msra.gmra.mrb[2].mxu1 %v1711_v41  ;;  %v1411_v41 = vpack.c.bf16 %v194_v57, %v193_v56  ;;  %v249_v35 = vld [vmem:[#allocation5 + $0x5e0] sm:$0xff]  ;;  %v204_v56 = vld [vmem:[#allocation5 + $0x478] sm:$0xff]  ;;  %v1461_v57 = vpack.c.bf16 %v252_v50, %v251_v49  ;;  %v840_v28 = vld [vmem:[#allocation7 + $0x28] sm:$0xff] }
  0x7c   :  { %1436 = vmatpush3.bf16.msra.mxu1 %v1435_v36  ;;  %1406 = vmatprep.subr.bf16.mxu0 %v1405_v38  ;;  %v250_v36 = vld [vmem:[#allocation5 + $0x5e8] sm:$0xff]  ;;  %v1455_v38 = vpack.c.bf16 %v232_v31, %v231_v29  ;;  %v1496_v29 = vpack.c.bf16 %v840_v28, %v839_v27  ;;  %v842_v31 = vld [vmem:[#allocation7 + $0x38] sm:$0xff] }
  0x7d   :  { %1438 = vmatprep.subr.bf16.mxu1 %v1437_v45  ;;  %688 = vmatprep.mubr.f32.mxu0 %v322_v51  ;;  %v1457_v45 = vpack.c.bf16 %v250_v36, %v249_v35  ;;  %v1427_v51 = vpack.c.bf16 %v202_v42, %v201_v40  ;;  %v844_v35 = vld [vmem:[#allocation7 + $0x48] sm:$0xff]  ;;  %v847_v40 = vld [vmem:[#allocation7 + $0x60] sm:$0xff] }
  0x7e   :  { %758 = vmatprep.mubr.f32.mxu1 %v323_v32  ;;  %v236_v32 = vld [vmem:[#allocation5 + $0x578] sm:$0xff]  ;;  %v1502_v36 = vpack.c.bf16 %v844_v35, %v843_v34  ;;  %v848_v42 = vld [vmem:[#allocation7 + $0x68] sm:$0xff] }
  0x7f   :  { %1408 = vmatpush3.bf16.msra.mxu0 %v1407_v53  ;;  %v1459_v53 = vpack.c.bf16 %v234_v46, %v233_v44  ;;  %v1463_v60 = vpack.c.bf16 %v236_v32, %v235_v58  ;;  %v1508_v44 = vpack.c.bf16 %v848_v42, %v847_v40  ;;  %v850_v46 = vld [vmem:[#allocation7 + $0x78] sm:$0xff] }
  0x80   :  { %1440 = vmatpush3.bf16.msra.mxu1 %v1439_v54  ;;  %1410 = vmatprep.subr.bf16.mxu0 %v1409_v55  ;;  %v1429_v54 = vpack.c.bf16 %v220_v48, %v219_v47  ;;  %v203_v55 = vld [vmem:[#allocation5 + $0x470] sm:$0xff] }
  0x81   :  { %1442 = vmatprep.subr.bf16.mxu1 %v1441_v59  ;;  %v1431_v59 = vpack.c.bf16 %v204_v56, %v203_v55 }
  0x83   :  { %1412 = vmatpush3.bf16.msra.mxu0 %v1411_v41  ;;  %v255_v41 = vld [vmem:[#allocation5 + $0x610] sm:$0xff] }
  0x84   :  { %1444 = vmatpush3.bf16.msra.mxu1 %v1443_v0  ;;  %1414 = vmatprep.subr.bf16.mxu0 %v1413_v1  ;;  %v256_v0 = vld [vmem:[#allocation5 + $0x618] sm:$0xff] }
  0x85   :  { %1446 = vmatprep.subr.bf16.mxu1 %v1445_v5  ;;  %v1469_v1 = vpack.c.bf16 %v256_v0, %v255_v41  ;;  %v1472_v5 = vpack.c.bf16 %v258_v3, %v257_v2 }
  0x87   :  { %1416 = vmatpush3.bf16.msra.mxu0 %v1415_v11  ;;  %v264_v11 = vld [vmem:[#allocation5 + $0x658] sm:$0xff] }
  0x88   :  { %1448 = vmatpush3.bf16.msra.mxu1 %v1447_v12  ;;  %1418 = vmatprep.subr.bf16.mxu0 %v1417_v14  ;;  %v1481_v12 = vpack.c.bf16 %v264_v11, %v263_v10  ;;  %v265_v14 = vld [vmem:[#allocation5 + $0x660] sm:$0xff] }
  0x89   :  { %1450 = vmatprep.subr.bf16.mxu1 %v1449_v18  ;;  %v1484_v16 = vpack.c.bf16 %v266_v15, %v265_v14  ;;  %v268_v18 = vld [vmem:[#allocation5 + $0x678] sm:$0xff] }
  0x8a   :  { %v1487_v19 = vpack.c.bf16 %v268_v18, %v267_v17 }
  0x8b   :  { %1420 = vmatpush3.bf16.msra.mxu0 %v1419_v24  ;;  %v1490_v24 = vpack.c.bf16 %v836_v22, %v835_v21 }
  0x8c   :  { %1452 = vmatpush3.bf16.msra.mxu1 %v1451_v25  ;;  %1422 = vmatprep.subr.bf16.mxu0 %v1421_v26  ;;  %v838_v25 = vld [vmem:[#allocation7 + $0x18] sm:$0xff] }
  0x8d   :  { %1454 = vmatprep.subr.bf16.mxu1 %v1453_v30  ;;  %v1493_v26 = vpack.c.bf16 %v838_v25, %v837_v23  ;;  %v841_v30 = vld [vmem:[#allocation7 + $0x30] sm:$0xff] }
  0x8e   :  { %v1499_v33 = vpack.c.bf16 %v842_v31, %v841_v30 }
  0x8f   :  { %1424 = vmatpush3.bf16.msra.mxu0 %v1423_v37  ;;  %v845_v37 = vld [vmem:[#allocation7 + $0x50] sm:$0xff] }
  0x90   :  { %1456 = vmatpush3.bf16.msra.mxu1 %v1455_v38  ;;  %1426 = vmatprep.subr.bf16.mxu0 %v1425_v39  ;;  %v846_v38 = vld [vmem:[#allocation7 + $0x58] sm:$0xff] }
  0x91   :  { %1458 = vmatprep.subr.bf16.mxu1 %v1457_v45  ;;  %v1505_v39 = vpack.c.bf16 %v846_v38, %v845_v37  ;;  %v849_v45 = vld [vmem:[#allocation7 + $0x70] sm:$0xff] }
  0x92   :  { %v1511_v47 = vpack.c.bf16 %v850_v46, %v849_v45 }
  0x93   :  { %1428 = vmatpush3.bf16.msra.mxu0 %v1427_v51 }
  0x94   :  { %1460 = vmatpush3.bf16.msra.mxu1 %v1459_v53  ;;  %1430 = vmatprep.subr.bf16.mxu0 %v1429_v54 }
  0x95   :  { %1462 = vmatprep.subr.bf16.mxu1 %v1461_v57 }
  0x97   :  { %1432 = vmatpush3.bf16.msra.mxu0 %v1431_v59 }
  0x98   :  { %1464 = vmatpush3.bf16.msra.mxu1 %v1463_v60  ;;  %1465 = vmatprep.subr.bf16.mxu0 %v1630_v63 }
  0x99   :  { %1489 = vmatprep.subr.bf16.mxu1 %v1630_v63 }
  0x9a   :  { %689 = vmatmul.mubr.f32.vlgmr.msra.gmra.mrb[4].mxu0 %v1716_v43  ;;  %v1475_v43 = vpack.c.bf16 %v260_v7, %v259_v6 }
  0x9b   :  { %1467 = vmatpush3.bf16.msra.mxu0 %v1466_v62  ;;  %759 = vmatmul.mubr.f32.vlgmr.msra.gmra.mrb[4].mxu1 %v1722_v52  ;;  %v261_v52 = vld [vmem:[#allocation5 + $0x640] sm:$0xff] }
  0x9c   :  { %1468 = vmatprep.subr.bf16.mxu0 %v1630_v63  ;;  %1235 = vmatprep.mubr.msk.f32.mxu0 %vm1631_vm0, %v1632_v4  ;;  %v1478_v9 = vpack.c.bf16 %v262_v8, %v261_v52  ;;  %v958_v52 = vld [vmem:[%s1763_s3] ss:$0 sm:$0xff]  ;;  %s1596_s3 = scalar_lea.vmem %s948_s27, 32 }
  0x9d   :  { %1270 = vmatprep.mubr.msk.f32.mxu1 %vm1631_vm0, %v1632_v4  ;;  %1491 = vmatpush3.bf16.msra.mxu1 %v1490_v24  ;;  %p1597_p10 = scmp.ne.s32.totalorder %s948_s27, %s1596_s3  ;;  %p1602_p12 = scmp.lt.s32.totalorder %s1596_s3, %s1596_s3 }
  0x9e   :  { %1492 = vmatprep.subr.bf16.mxu1 %v1630_v63 }
  0x9f   :  { %1470 = vmatpush3.bf16.msra.mxu0 %v1469_v1  ;;  %p1603_p13 = por %p1602_p12, %p1601_p11 }
  0xa0   :  { %1471 = vmatprep.subr.bf16.mxu0 %v1630_v63 }
  0xa1   :  { %1494 = vmatpush3.bf16.msra.mxu1 %v1493_v26  ;;  %p1604_p0 = pnand %p1603_p13, %p1597_p10 }
  0xa2   :  { %1495 = vmatprep.subr.bf16.mxu1 %v1630_v63 }
  0xa3   :  { %1473 = vmatpush3.bf16.msra.mxu0 %v1472_v5 }
  0xa4   :  { %1474 = vmatprep.subr.bf16.mxu0 %v1630_v63 }
  0xa5   :  { %1497 = vmatpush3.bf16.msra.mxu1 %v1496_v29 }
  0xa6   :  { %1498 = vmatprep.subr.bf16.mxu1 %v1630_v63 }
  0xa7   :  { %1476 = vmatpush3.bf16.msra.mxu0 %v1475_v43 }
  0xa8   :  { %1477 = vmatprep.subr.bf16.mxu0 %v1630_v63 }
  0xa9   :  { %1500 = vmatpush3.bf16.msra.mxu1 %v1499_v33 }
  0xaa   :  { %1501 = vmatprep.subr.bf16.mxu1 %v1630_v63 }
  0xab   :  { %1479 = vmatpush3.bf16.msra.mxu0 %v1478_v9 }
  0xac   :  { %1480 = vmatprep.subr.bf16.mxu0 %v1630_v63 }
  0xad   :  { %1503 = vmatpush3.bf16.msra.mxu1 %v1502_v36 }
  0xae   :  { %1504 = vmatprep.subr.bf16.mxu1 %v1630_v63 }
  0xaf   :  { %1482 = vmatpush3.bf16.msra.mxu0 %v1481_v12 }
  0xb0   :  { %1483 = vmatprep.subr.bf16.mxu0 %v1630_v63 }
  0xb1   :  { %1506 = vmatpush3.bf16.msra.mxu1 %v1505_v39 }
  0xb2   :  { %1507 = vmatprep.subr.bf16.mxu1 %v1630_v63 }
  0xb3   :  { %1485 = vmatpush3.bf16.msra.mxu0 %v1484_v16 }
  0xb4   :  { %1486 = vmatprep.subr.bf16.mxu0 %v1630_v63 }
  0xb5   :  { %1509 = vmatpush3.bf16.msra.mxu1 %v1508_v44 }
  0xb6   :  { %1510 = vmatprep.subr.bf16.mxu1 %v1630_v63 }
  0xb7   :  { %1488 = vmatpush3.bf16.msra.mxu0 %v1487_v19 }
  0xb9   :  { %1512 = vmatpush3.bf16.msra.mxu1 %v1511_v47 }
  0xba   :  { %1236 = vmatmul.mubr.f32.vlgmr.msra.gmra.mrb[6].mxu0 %v957_v20 }
 0x12d   :  { %v991_v48 = vpop.f32.mrb[0].mxu0 }
 0x12e   :  { %v1026_v49 = vpop.f32.mrb[0].mxu1  ;;  %v992_v50 = vpop.f32.mrb[1].mxu0 }
 0x12f   :  { %v993_v51 = vadd.f32 %v992_v50, %v991_v48  ;;  %v1027_v53 = vpop.f32.mrb[1].mxu1 }
 0x130   :  { %v1028_v54 = vadd.f32 %v1027_v53, %v1026_v49 }
 0x132   :  { %v481_v55 = vadd.f32 %v1028_v54, %v993_v51 }
 0x14d   :  { %v1061_v56 = vpop.f32.mrb[2].mxu0 }
 0x14e   :  { %v1062_v57 = vpop.f32.mrb[3].mxu0  ;;  %v1096_v58 = vpop.f32.mrb[2].mxu1 }
 0x14f   :  { %v1063_v32 = vadd.f32 %v1062_v57, %v1061_v56  ;;  %v1097_v59 = vpop.f32.mrb[3].mxu1 }
 0x150   :  { %v1098_v60 = vadd.f32 %v1097_v59, %v1096_v58 }
 0x151   :  { %v551_v61 = vadd.f32 %v1063_v32, %v481_v55 }
 0x153   :  { %v621_v13 = vadd.f32 %v1098_v60, %v551_v61 }
 0x16d   :  { %v1131_v62 = vpop.f32.mrb[4].mxu0 }
 0x16e   :  { %v1132_v63 = vpop.f32.mrb[5].mxu0  ;;  %v1166_v41 = vpop.f32.mrb[4].mxu1 }
 0x16f   :  { %v1133_v0 = vadd.f32 %v1132_v63, %v1131_v62  ;;  %v1167_v1 = vpop.f32.mrb[5].mxu1 }
 0x170   :  { %v1168_v2 = vadd.f32 %v1167_v1, %v1166_v41 }
 0x171   :  { %v691_v3 = vadd.f32 %v1133_v0, %v621_v13 }
 0x173   :  { %v761_v4 = vadd.f32 %v1168_v2, %v691_v3 }
 0x18d   :  { %v830_v5 = vpop.f32.mrb[6].mxu0 }
 0x18e   :  { %v831_v6 = vadd.f32 %v830_v5, %v761_v4  ;;  %v1237_v7 = vpop.f32.mrb[7].mxu0 }
 0x190   :  { %v834_v43 = vmax.f32 %v831_v6, 0.0 }
 0x192   :  { %1271 = vmatmul.mubr.f32.vlgmr.msra.gmra.mrb[6].mxu1 %v834_v43 }
 0x265   :  { %v924_v8 = vpop.f32.mrb[6].mxu1 }
 0x266   :  { %v925_v9 = vadd.f32 %v958_v52, %v924_v8  ;;  %v1272_v10 = vpop.f32.mrb[7].mxu1 }
 0x268   :  { %v929_v11 = vsel %vm928_vm1, %v925_v9, -inf }
 0x269   :  { %930 = vmax.xlane.f32.xlu0 %v929_v11 }
 0x2f6   :  { %v931_v12 = vpop.xlane.xlu0 %930 }
 0x2f7   :  { %v932_v14 = vsub.f32 %v925_v9, %v931_v12 }
 0x2f9   :  { %v933_v15 = vmul.f32 1.442695, %v932_v14 }
 0x2fb   :  { %1526 = vpow2.f32 %v933_v15 }
 0x305   :  { %v1527_v16 = vpop.eup %1526 }
 0x306   :  { %v935_v17 = vsel %vm928_vm1, %v1527_v16, 0.0 }
 0x307   :  { %936 = vadd.xlane.f32.xlu0 %v935_v17 }
 0x394   :  { %v937_v18 = vpop.xlane.xlu0 %936 }
 0x395   :  { %1528 = vrcp.f32 %v937_v18 }
 0x39f   :  { %v1529_v19 = vpop.eup %1528 }
 0x3a0   :  { %v939_v20 = vmul.f32 %v1529_v19, %v1527_v16 }
 0x3a2   :  { %940 = vst [vmem:[#allocation8] sm:$0x3] %v939_v20 }
 0x3a3   :  { %1607 = shalt.err (!%p1604_p0)
}
 0x3a4   :  { %s1608_s30 = scalar_lea.hbm %s1764_s4, 32 }
 0x3a5   :  { %p1609_p1 = scmp.ne.s32.totalorder %s1764_s4, %s1608_s30  ;;  %p1612_p2 = scmp.lt.u32.totalorder %s1608_s30, %s1764_s4 }
 0x3a7   :  { %p1614_p3 = pnand %p1612_p2, %p1609_p1 }
 0x3a9   :  { %1617 = shalt.err (!%p1614_p3)
}
 0x3aa   :  { %950 = dma.vmem_to_hbm [thread:$0]  %s948_s27, 32, %s1764_s4, [#allocation4]  }
 0x3ab   :  { %1622 = dma.done.wait [#allocation4], 32  }
 0x3ac   :  { %1623 = vsyncadd [#allocation4], 4294967264 }
 0x3ad   :  { %954 = vsyncpa [#allocation3], 1 }
 0x3ae   :  { %955 = vsyncpa [#allocation6], 1 }
 0x3af   :  { %956 = vsyncpa [#allocation4], 1 }

</bundles_post_ra>
